<compile_context>
chip_gen: v7x
topology: tpu7x:2x2x1
jax: 0.10.0
libtpu: 0.0.40
codegen_flags: <defaults>
</compile_context>

<pallas_src>
import functools

import jax
import jax.numpy as jnp
from jax.experimental import pallas as pl
from jax.experimental.pallas import tpu as pltpu

_VMEM_LIMIT = 32 * 1024 * 1024     # raise v5e's 16 MiB default; < v7x's 64 MiB/TC
_BLOCK_BYTES = 4 * 1024 * 1024     # ~4 MiB input blocks (good on v5e/v6e/v7x)
_MAX_BATCH_BLOCK = 256             # batch tile (multiple of 8) when B is large


def _round_up(x, m):
    return ((x + m - 1) // m) * m


def _pick_blocks(B, F, target_bytes=_BLOCK_BYTES):
    """Pick a (rB, tF) block targeting ~target_bytes, decoupled from small B."""
    rB = B if B <= _MAX_BATCH_BLOCK else _MAX_BATCH_BLOCK       # full dim or mult-of-8
    lane_budget = max(target_bytes // (rB * 4), 128)
    tF = max(128, min(_round_up(F, 128), (lane_budget // 128) * 128))
    return rB, tF


# --------------------- Pass 1: per-sample |x| max reduction ---------------------
def _rowmax_kernel(x_ref, m_ref, *, F, tF, ragged):
    k = pl.program_id(1)                       # lane-tile (reduction) axis

    @pl.when(k == 0)
    def _():
        m_ref[...] = jnp.zeros_like(m_ref)     # |x| >= 0, so 0 is the identity

    a = jnp.abs(x_ref[...].astype(jnp.float32))
    if ragged:                                 # static: only when F % tF != 0
        col = jax.lax.broadcasted_iota(jnp.int32, a.shape, 1)
        a = jnp.where(col < (F - k * tF), a, 0.0)   # mask OOB lanes of last tile
    m_ref[...] = jnp.maximum(m_ref[...], jnp.max(a, axis=-1, keepdims=True))


def _row_abs_max(x2d):
    """x2d: (B, F) -> (B, 1) float32 per-sample abs-max (exact global statistic)."""
    B, F = x2d.shape
    rB, tF = _pick_blocks(B, F)
    nb = pl.cdiv(B, rB)
    nk = pl.cdiv(F, tF)
    itemsize = jnp.dtype(x2d.dtype).itemsize

    return pl.pallas_call(
        functools.partial(_rowmax_kernel, F=F, tF=tF, ragged=(F % tF != 0)),
        out_shape=jax.ShapeDtypeStruct((B, 1), jnp.float32),
        grid=(nb, nk),
        in_specs=[pl.BlockSpec((rB, tF), lambda i, k: (i, k))],
        out_specs=pl.BlockSpec((rB, 1), lambda i, k: (i, 0)),   # resident accumulator
        compiler_params=pltpu.CompilerParams(
            dimension_semantics=("parallel", "arbitrary"),
            vmem_limit_bytes=_VMEM_LIMIT,
        ),
        cost_estimate=pl.CostEstimate(
            flops=2 * B * F, transcendentals=0,
            bytes_accessed=B * F * itemsize + B * 4),
    )(x2d)


# --------------------- Pass 2: fused qparams + tiled quantize ---------------------
def _quantize_kernel(rowmax_ref, x_ref, o_ref, *, num_bits, batch):
    # qparams recomputed in-kernel from the tiny resident (B, 1) row-max block
    # (fuses out the XLA glue): scale = mean_b(row_max), delta = scale / 2**nb.
    row_max = rowmax_ref[...]                                   # (B, 1) f32
    scale = jnp.sum(row_max, axis=0, keepdims=True) / batch     # (1, 1)
    delta = scale / (2.0 ** num_bits)                           # (1, 1)
    qmax = 2.0 ** num_bits - 1.0

    x = x_ref[...]
    xf = x.astype(jnp.float32)
    # signed=False => min_values = 0; true division like torch's div_()
    q = jnp.round(jnp.clip(xf / delta, 0.0, qmax))
    out = q * delta                                             # dequantize
    # preserve_zero (also neutralizes NaNs from the all-zero / delta==0 case)
    o_ref[...] = jnp.where(x != 0.0, out, jnp.zeros_like(out)).astype(o_ref.dtype)


def quantize_forward(x, num_bits=8):
    """Forward of Quantize(num_bits) in training mode. x: (B, ...) float array."""
    if num_bits is None or num_bits >= 32:
        return x

    B = x.shape[0]
    F = 1
    for d in x.shape[1:]:
        F *= d
    x2d = x.reshape(B, F)                    # contiguous view, no extra HBM pass

    # ---- Pass 1: per-sample abs-max (Pallas reduction) ----
    row_max = _row_abs_max(x2d)              # (B, 1) f32

    # ---- Pass 2: fully parallel, pipelined elementwise quantize ----
    rB, tF = _pick_blocks(B, F)
    nb = pl.cdiv(B, rB)
    nf = pl.cdiv(F, tF)
    itemsize = jnp.dtype(x.dtype).itemsize

    out2d = pl.pallas_call(
        functools.partial(_quantize_kernel, num_bits=num_bits, batch=float(B)),
        out_shape=jax.ShapeDtypeStruct((B, F), x.dtype),
        grid=(nb, nf),
        in_specs=[
            pl.BlockSpec((B, 1), lambda i, j: (0, 0)),        # row_max, resident
            pl.BlockSpec((rB, tF), lambda i, j: (i, j)),      # x tile
        ],
        out_specs=pl.BlockSpec((rB, tF), lambda i, j: (i, j)),
        compiler_params=pltpu.CompilerParams(
            dimension_semantics=("parallel", "parallel"),     # megacore / v7x dual-TC
            vmem_limit_bytes=_VMEM_LIMIT,
        ),
        cost_estimate=pl.CostEstimate(
            flops=8 * B * F, transcendentals=B * F,
            bytes_accessed=2 * B * F * itemsize + B * 4),
    )(row_max, x2d)

    return out2d.reshape(x.shape)


# ------------------------------- reference -------------------------------
def _reference(x, num_bits=8):
    """Pure-JAX mirror of the PyTorch training-mode path (true division)."""
    B = x.shape[0]
    max_values = jnp.max(jnp.abs(x).reshape(B, -1), axis=-1)   # (B,)
    scale = jnp.mean(max_values)                               # reduce_dim=0, 'mean'
    delta = scale / (2.0 ** num_bits)
    qmax = 2.0 ** num_bits - 1.0
    out = jnp.round(jnp.clip(x / delta, 0.0, qmax)) * delta
    out = jnp.where(x != 0.0, out, jnp.zeros_like(out))
    return out.astype(x.dtype)


if __name__ == "__main__":
    key = jax.random.PRNGKey(0)
    B, C, H, W = 2, 4, 16, 16
    x = jax.random.normal(key, (B, C, H, W), dtype=jnp.float32)

    # module "parameter": running_max_values EMA buffer (unused on this path)
    running_max_values = jnp.zeros((1,), dtype=jnp.float32)

    fwd = jax.jit(functools.partial(quantize_forward, num_bits=8))
    out = jax.block_until_ready(fwd(x))

    ref = _reference(x, num_bits=8)
    assert out.shape == x.shape and out.dtype == x.dtype
    assert jnp.allclose(out, ref, atol=1e-6, rtol=1e-6), "mismatch vs reference"

    print("KERNEL_OK")
</pallas_src>

<mosaic_0001>
module attributes {stable_mosaic.version = 11 : i64} {
  func.func @_quantize_kernel(%arg0: i32, %arg1: i32, %arg2: memref<2x1xf32, #tpu.memory_space<vmem>>, %arg3: memref<2x1024xf32, #tpu.memory_space<vmem>>, %arg4: memref<2x1024xf32, #tpu.memory_space<vmem>>) attributes {dimension_semantics = [#tpu.dimension_semantics<parallel>, #tpu.dimension_semantics<parallel>], iteration_bounds = array<i64: 1, 1>, scalar_prefetch = 0 : i64, scratch_operands = 0 : i64, tpu.core_type = #tpu.core_type<tc>, window_params = [{pipeline_mode = #tpu.pipeline_mode<synchronous>, transform_indices = @transform_0, window_bounds = array<i64: 2, 1>}, {transform_indices = @transform_1, window_bounds = array<i64: 2, 1024>}, {transform_indices = @transform_2, window_bounds = array<i64: 2, 1024>}]} {
    %c0 = arith.constant 0 : index
    %c0_0 = arith.constant 0 : index
    %0 = vector.load %arg2[%c0, %c0_0] : memref<2x1xf32, #tpu.memory_space<vmem>>, vector<2x1xf32>
    %cst = arith.constant dense<0.000000e+00> : vector<1xf32>
    %1 = vector.multi_reduction <add>, %0, %cst [0] : vector<2x1xf32> to vector<1xf32>
    %2 = vector.shape_cast %1 : vector<1xf32> to vector<1x1xf32>
    %cst_1 = arith.constant 2.000000e+00 : f32
    %3 = vector.broadcast %cst_1 : f32 to vector<1x1xf32>
    %4 = arith.divf %2, %3 : vector<1x1xf32>
    %cst_2 = arith.constant 2.560000e+02 : f32
    %5 = vector.broadcast %cst_2 : f32 to vector<1x1xf32>
    %6 = arith.divf %4, %5 : vector<1x1xf32>
    %c0_3 = arith.constant 0 : index
    %c0_4 = arith.constant 0 : index
    %7 = vector.load %arg3[%c0_3, %c0_4] : memref<2x1024xf32, #tpu.memory_space<vmem>>, vector<2x1024xf32>
    %8 = vector.broadcast %6 : vector<1x1xf32> to vector<2x1024xf32>
    %9 = arith.divf %7, %8 : vector<2x1024xf32>
    %cst_5 = arith.constant 0.000000e+00 : f32
    %cst_6 = arith.constant 2.550000e+02 : f32
    %10 = vector.broadcast %cst_5 : f32 to vector<2x1024xf32>
    %11 = arith.maximumf %10, %9 : vector<2x1024xf32>
    %12 = vector.broadcast %cst_6 : f32 to vector<2x1024xf32>
    %13 = arith.minimumf %12, %11 : vector<2x1024xf32>
    %14 = math.roundeven %13 : vector<2x1024xf32>
    %15 = vector.broadcast %6 : vector<1x1xf32> to vector<2x1024xf32>
    %16 = arith.mulf %14, %15 : vector<2x1024xf32>
    %cst_7 = arith.constant 0.000000e+00 : f32
    %17 = vector.broadcast %cst_7 : f32 to vector<2x1024xf32>
    %18 = arith.cmpf one, %7, %17 : vector<2x1024xf32>
    %cst_8 = arith.constant 0.000000e+00 : f32
    %19 = vector.broadcast %cst_8 : f32 to vector<2x1024xf32>
    %20 = arith.select %18, %16, %19 : vector<2x1024xi1>, vector<2x1024xf32>
    %c0_9 = arith.constant 0 : index
    %c0_10 = arith.constant 0 : index
    %21 = vector.load %arg4[%c0_9, %c0_10] : memref<2x1024xf32, #tpu.memory_space<vmem>>, vector<2x1024xf32>
    tpu.vector_store %arg4[%c0_9, %c0_10], %20 {strides = array<i32>} : memref<2x1024xf32, #tpu.memory_space<vmem>>, vector<2x1024xf32>,
    return
  }
  func.func @transform_0(%arg0: i32, %arg1: i32) -> (i32, i32) {
    %c0_i32 = arith.constant 0 : i32
    %c0_i32_0 = arith.constant 0 : i32
    %c0_i32_1 = arith.constant 0 : i32
    return %c0_i32, %c0_i32_0 : i32, i32
  }
  func.func @transform_1(%arg0: i32, %arg1: i32) -> (i32, i32) {
    %c0_i32 = arith.constant 0 : i32
    return %arg0, %arg1 : i32, i32
  }
  func.func @transform_2(%arg0: i32, %arg1: i32) -> (i32, i32) {
    %c0_i32 = arith.constant 0 : i32
    return %arg0, %arg1 : i32, i32
  }
}

module attributes {stable_mosaic.version = 11 : i64} {
  func.func @_rowmax_kernel(%arg0: i32, %arg1: i32, %arg2: memref<2x1024xf32, #tpu.memory_space<vmem>>, %arg3: memref<2x1xf32, #tpu.memory_space<vmem>>) attributes {dimension_semantics = [#tpu.dimension_semantics<parallel>, #tpu.dimension_semantics<arbitrary>], iteration_bounds = array<i64: 1, 1>, scalar_prefetch = 0 : i64, scratch_operands = 0 : i64, tpu.core_type = #tpu.core_type<tc>, window_params = [{transform_indices = @transform_0, window_bounds = array<i64: 2, 1024>}, {transform_indices = @transform_1, window_bounds = array<i64: 2, 1>}]} {
    %c0_i32 = arith.constant 0 : i32
    %0 = arith.cmpi eq, %arg1, %c0_i32 : i32
    %1 = arith.extui %0 : i1 to i32
    %c0_i32_0 = arith.constant 0 : i32
    %2 = arith.cmpi ne, %1, %c0_i32_0 : i32
    scf.if %2 {
      %cst_6 = arith.constant 0.000000e+00 : f32
      %10 = vector.broadcast %cst_6 : f32 to vector<2x1xf32>
      %c0_7 = arith.constant 0 : index
      %c0_8 = arith.constant 0 : index
      %11 = vector.load %arg3[%c0_7, %c0_8] : memref<2x1xf32, #tpu.memory_space<vmem>>, vector<2x1xf32>
      tpu.vector_store %arg3[%c0_7, %c0_8], %10 {strides = array<i32>} : memref<2x1xf32, #tpu.memory_space<vmem>>, vector<2x1xf32>,
    } else {
    }
    %c0 = arith.constant 0 : index
    %c0_1 = arith.constant 0 : index
    %3 = vector.load %arg2[%c0, %c0_1] : memref<2x1024xf32, #tpu.memory_space<vmem>>, vector<2x1024xf32>
    %4 = math.absf %3 : vector<2x1024xf32>
    %c0_2 = arith.constant 0 : index
    %c0_3 = arith.constant 0 : index
    %5 = vector.load %arg3[%c0_2, %c0_3] : memref<2x1xf32, #tpu.memory_space<vmem>>, vector<2x1xf32>
    %cst = arith.constant dense<0xFF800000> : vector<2xf32>
    %6 = vector.multi_reduction <maximumf>, %4, %cst [1] : vector<2x1024xf32> to vector<2xf32>
    %7 = vector.shape_cast %6 : vector<2xf32> to vector<2x1xf32>
    %8 = arith.maximumf %5, %7 : vector<2x1xf32>
    %c0_4 = arith.constant 0 : index
    %c0_5 = arith.constant 0 : index
    %9 = vector.load %arg3[%c0_4, %c0_5] : memref<2x1xf32, #tpu.memory_space<vmem>>, vector<2x1xf32>
    tpu.vector_store %arg3[%c0_4, %c0_5], %8 {strides = array<i32>} : memref<2x1xf32, #tpu.memory_space<vmem>>, vector<2x1xf32>,
    return
  }
  func.func @transform_0(%arg0: i32, %arg1: i32) -> (i32, i32) {
    %c0_i32 = arith.constant 0 : i32
    return %arg0, %arg1 : i32, i32
  }
  func.func @transform_1(%arg0: i32, %arg1: i32) -> (i32, i32) {
    %c0_i32 = arith.constant 0 : i32
    %c0_i32_0 = arith.constant 0 : i32
    return %arg0, %c0_i32 : i32, i32
  }
}

</mosaic_0001>

<bundles_post_ra>
// kernel: quantize_forward.3
= control target key start
LH: loop header
LB: loop body
LE: loop exit
PB: predicated region body
PF: predicated region fallthrough
CT: control target
= control target key end

     0   :  { %vm12_vm0 = vcmask 1024   ;;  %v58_v0 = vmov 0   ;;  %s89_s0 = inlined_call_operand.vmem [shape: f32[2,1], index: 0, kind: input, shape index: {}]   ;;  %s90_s1 = inlined_call_operand.vmem [shape: f32[2,1024], index: 1, kind: input, shape index: {}]   ;;  %s91_s2 = inlined_call_operand.vmem [shape: f32[2,1024], index: 2, kind: output, shape index: {}]  }
   0x1   :  { %55 = vset.pattern.permute.xlu0 %v58_v0  ;;  %v11_v1 = vld [vmem:[%s89_s0] sm:$0x3]  ;;  %v25_v13 = vld [vmem:[%s90_s1 + $0x8] sm:$0xff] }
   0x2   :  { %v13_v2 = vsel %vm12_vm0, %v11_v1, 0.0  ;;  %v24_v12 = vld [vmem:[%s90_s1] sm:$0xff]  ;;  %vm43_vm2 = vcmp.ne.f32.partialorder %v25_v13, 0.0 }
   0x3   :  { %v14_v3 = vrot.slane %v13_v2, 4  ;;  %vm42_vm1 = vcmp.ne.f32.partialorder %v24_v12, 0.0 }
   0x5   :  { %v15_v4 = vadd.f32 %v14_v3, %v13_v2 }
   0x7   :  { %v16_v5 = vrot.slane %v15_v4, 2 }
   0x9   :  { %v17_v6 = vadd.f32 %v16_v5, %v15_v4 }
   0xb   :  { %v18_v7 = vrot.slane %v17_v6, 1 }
   0xd   :  { %v19_v8 = vadd.f32 %v18_v7, %v17_v6 }
   0xf   :  { %v21_v9 = vmul.f32 0.5, %v19_v8 }
  0x11   :  { %v23_v10 = vmul.f32 0.00390625, %v21_v9 }
  0x13   :  { %28 = vperm.xlu0 %55, %v23_v10  }
  0x92   :  { %v29_v11 = vpop.permute.xlu0 %28 }
  0x93   :  { %56 = vrcp.f32 %v29_v11 }
  0x9d   :  { %v57_v14 = vpop.eup %56 }
  0x9e   :  { %v32_v15 = vmul.f32 %v57_v14, %v24_v12  ;;  %v33_v16 = vmul.f32 %v57_v14, %v25_v13 }
  0xa0   :  { %v34_v17 = vmax.f32 %v32_v15, 0.0  ;;  %v35_v18 = vmax.f32 %v33_v16, 0.0 }
  0xa2   :  { %v36_v19 = vmin.f32 %v34_v17, 255.0  ;;  %v37_v20 = vmin.f32 %v35_v18, 255.0 }
  0xa4   :  { %v52_v21 = vround.rtne.f32 %v36_v19  ;;  %v53_v22 = vround.rtne.f32 %v37_v20 }
  0xa6   :  { %v40_v23 = vmul.f32 %v52_v21, %v29_v11  ;;  %v41_v24 = vmul.f32 %v53_v22, %v29_v11 }
  0xa8   :  { %v44_v25 = vsel %vm42_vm1, %v40_v23, 0.0  ;;  %v45_v26 = vsel %vm43_vm2, %v41_v24, 0.0 }
  0xa9   :  { %46 = vst [vmem:[%s91_s2] sm:$0xff] %v44_v25  ;;  %47 = vst [vmem:[%s91_s2 + $0x8] sm:$0xff] %v45_v26 }

// kernel: quantize_forward.2
= control target key start
LH: loop header
LB: loop body
LE: loop exit
PB: predicated region body
PF: predicated region fallthrough
CT: control target
= control target key end

     0   :  { %v25_v0 = vlaneseq  ;;  %vm12_vm0 = vcmask 1024   ;;  %v90_v3 = vmov 1983009808   ;;  %v91_v8 = vmov 0.0   ;;  %s127_s0 = inlined_call_operand.vmem [shape: f32[2,1024], index: 0, kind: input, shape index: {}]   ;;  %s128_s1 = inlined_call_operand.vmem [shape: f32[2,1], index: 1, kind: output, shape index: {}]  }
   0x1   :  { %v14_v1 = vld [vmem:[%s127_s0] sm:$0xff]  ;;  %v15_v2 = vld [vmem:[%s127_s0 + $0x8] sm:$0xff]  ;;  %v23_v4 = vunpack.c.l.s4 %v90_v3  ;;  %13 = vst.msk [vmem:[%s128_s1] sm:$0x3] %vm12_vm0, %v91_v8  ;;  %vm63_vm1 = vcmask 1041408  }
   0x2   :  { %v16_v5 = vand.u32 2147483647, %v14_v1  ;;  %v17_v6 = vand.u32 2147483647, %v15_v2  ;;  %v26_v7 = vshrl.u32 %v25_v0, 7 }
   0x3   :  { %v24_v9 = vunpack.c.0.s8 %v23_v4 }
   0x4   :  { %v21_v10 = vcombine.high %v16_v5, %v16_v5  ;;  %v38_v11 = vcombine.high %v17_v6, %v17_v6 }
   0x5   :  { %v27_v12 = vsub.s32 %v24_v9, %v26_v7 }
   0x7   :  { %v28_v13 = vrot.slane %v16_v5, %v27_v12  ;;  %v35_v14 = vrot.slane %v21_v10, %v27_v12  ;;  %v45_v15 = vrot.slane %v17_v6, %v27_v12  ;;  %v52_v16 = vrot.slane %v38_v11, %v27_v12 }
   0x8   :  { %v18_v36 = vld [vmem:[%s128_s1] sm:$0x3] }
   0x9   :  { %v36_v17 = vcombine.high %v28_v13, %v28_v13  ;;  %v37_v18 = vcombine.high %v35_v14, %v35_v14  ;;  %v53_v19 = vcombine.high %v45_v15, %v45_v15  ;;  %v54_v20 = vcombine.high %v52_v16, %v52_v16 }
   0xa   :  { %v64_v21 = vsel %vm63_vm1, %v28_v13, -inf  ;;  %v66_v22 = vsel %vm63_vm1, %v35_v14, -inf  ;;  %v68_v23 = vsel %vm63_vm1, %v45_v15, -inf  ;;  %v72_v24 = vsel %vm63_vm1, %v52_v16, -inf }
   0xb   :  { %v65_v25 = vsel %vm63_vm1, %v36_v17, -inf  ;;  %v67_v26 = vsel %vm63_vm1, %v37_v18, -inf  ;;  %v69_v27 = vmax.f32 %v64_v21, %v68_v23  ;;  %v70_v28 = vsel %vm63_vm1, %v53_v19, -inf }
   0xc   :  { %v71_v29 = vmax.f32 %v65_v25, %v70_v28  ;;  %v73_v30 = vmax.f32 %v66_v22, %v72_v24  ;;  %v74_v31 = vsel %vm63_vm1, %v54_v20, -inf }
   0xd   :  { %v75_v32 = vmax.f32 %v67_v26, %v74_v31 }
   0xe   :  { %v76_v33 = vmax.f32 %v69_v27, %v71_v29 }
   0xf   :  { %v77_v34 = vmax.f32 %v73_v30, %v75_v32 }
  0x11   :  { %v78_v35 = vmax.f32 %v76_v33, %v77_v34 }
  0x13   :  { %79 = vmax.xlane.f32.xlu0 %v78_v35 }
  0xa0   :  { %v80_v37 = vpop.xlane.xlu0 %79 }
  0xa1   :  { %v81_v38 = vmax.f32 %v18_v36, %v80_v37 }
  0xa3   :  { %83 = vst.msk [vmem:[%s128_s1] sm:$0x3] %vm12_vm0, %v81_v38 }

</bundles_post_ra>
